<compile_context>
chip_gen: v7x
topology: tpu7x:2x2x1
jax: 0.10.0
libtpu: 0.0.40
codegen_flags: <defaults>
</compile_context>

<pallas_src>
import functools

import jax
import jax.numpy as jnp
from jax.experimental import pallas as pl
from jax.experimental.pallas import tpu as pltpu

DEFAULT_EMBEDDING_DIM = 128     # output_dim (lane-dense)
DEFAULT_HIDDEN_DIM = 128        # hidden_dim (lane-dense)
DEFAULT_DROPOUT_RATE = 0.2      # identity in eval mode
GAT_HEADS = 4
LEAKY_SLOPE = 0.2
BN_EPS = 1e-5
NEG_INF = -1e30


# ----------------------------------------------------------------------------
# Kernel: whole network, VMEM-resident, single grid point
# ----------------------------------------------------------------------------
def _graphnet_kernel(x_ref, amean_ref, mask_ref, w_ref, vatt_ref, b_ref, out_ref,
                     *, heads, d_in, d_hid, d_out):
    f32 = jnp.float32
    bf16 = jnp.bfloat16

    x = x_ref[...]                            # (N, d_in)  bf16
    a_mean = amean_ref[...]                   # (N, N)     bf16 mean-aggregation operator
    mask_add = mask_ref[...]                  # (N, N)     f32 additive mask (0 / -1e30)
    n = a_mean.shape[0]

    # Static slices of the packed weight stack (zero-cost ref views).
    r_wg = heads * d_out                      # 512
    r_w2 = 2 * d_hid                          # 256
    w_gat = w_ref[0:r_wg, :]                  # (H*E, E)  bf16, pre-scaled by 1/H
    w2 = w_ref[r_wg:r_wg + r_w2, :]           # (2*hid, out) bf16
    w1 = w_ref[r_wg + r_w2:r_wg + r_w2 + 2 * d_in, :]   # (2*in, hid) bf16
    b1 = b_ref[0:1, :]                        # (1, hid) f32 (BN folded)
    b2 = b_ref[1:2, :]                        # (1, out) f32 (BN folded)
    bg = b_ref[2:3, :]                        # (1, out) f32

    # ---------------- SAGEConv 1 (+ folded eval BN) + ReLU (+ Dropout = id) ----------------
    agg = jnp.dot(a_mean, x, preferred_element_type=f32)          # mean over in-neighbors
    xc = jnp.concatenate([agg.astype(bf16), x], axis=-1)          # (N, 2*d_in)   K=64
    h = jnp.dot(xc, w1, preferred_element_type=f32) + b1
    h = jnp.maximum(h, 0.0).astype(bf16)                          # (N, d_hid)

    # ---------------- SAGEConv 2 (+ folded eval BN) + ReLU (+ Dropout = id) ----------------
    agg2 = jnp.dot(a_mean, h, preferred_element_type=f32)
    hc = jnp.concatenate([agg2.astype(bf16), h], axis=-1)         # (N, 2*d_hid)  K=256
    h2 = jnp.dot(hc, w2, preferred_element_type=f32) + b2
    h2 = jnp.maximum(h2, 0.0).astype(bf16)                        # (N, d_out)

    # ---------------- GATConv (heads=4, concat=False -> mean over heads) ----------------
    # All 2*H attention terms in one contraction:
    #   att[k, j] = vatt[k] . h2_j  ; rows 0:H are the dst terms, rows H:2H the src terms.
    att = jax.lax.dot_general(vatt_ref[...], h2,
                              (((1,), (1,)), ((), ())),
                              preferred_element_type=f32)         # (2H, N)
    sd = att[0:heads, :]                                          # (H, N) dst term (node i)
    ss = att[heads:2 * heads, :]                                  # (H, N) src term (node j)

    # Batched masked softmax over all heads at once: logits[h, i, j]
    logits = sd[:, :, None] + ss[:, None, :]                      # (H, N, N)
    logits = jnp.where(logits > 0, logits, LEAKY_SLOPE * logits)  # LeakyReLU(0.2)
    logits = logits + mask_add[None, :, :]                        # additive -1e30 off-edge
    m = jnp.max(logits, axis=-1, keepdims=True)
    p = jnp.exp(logits - m)                                       # off-edge underflows to 0
    denom = jnp.sum(p, axis=-1, keepdims=True)                    # >= 1 (self-loops present)
    alpha = (p * pl.reciprocal(denom, approx=True)).astype(bf16)  # (H, N, N)

    # Head-stacked output:  sum_h alpha_h @ h2 @ W_h == [m_0 | ... | m_3] @ vstack(W_h)
    mh = [jnp.dot(alpha[hd], h2, preferred_element_type=f32).astype(bf16)
          for hd in range(heads)]                                 # 4x (N, E) small matmuls
    mcat = jnp.concatenate(mh, axis=-1)                           # (N, H*E)   K=512
    out = jnp.dot(mcat, w_gat, preferred_element_type=f32) + bg   # w_gat pre-scaled by 1/H
    out = jnp.maximum(out, 0.0)

    # ---------------- global mean pool over nodes (batch=None path) ----------------
    out_ref[...] = (jnp.sum(out, axis=0, keepdims=True) * (1.0 / n)).astype(out_ref.dtype)


# ----------------------------------------------------------------------------
# Parameter initialization (PyTorch-style, Linear weights stored as (in, out))
# ----------------------------------------------------------------------------
def init_params(key, input_dim,
                hidden_dim=DEFAULT_HIDDEN_DIM,
                output_dim=DEFAULT_EMBEDDING_DIM,
                heads=GAT_HEADS):
    ks = jax.random.split(key, 24)
    idx = {"i": 0}

    def nxt():
        k = ks[idx["i"]]
        idx["i"] += 1
        return k

    p = {}
    b = 1.0 / (input_dim ** 0.5)
    p["sage1_wl"] = jax.random.uniform(nxt(), (input_dim, hidden_dim), jnp.float32, -b, b)
    p["sage1_wr"] = jax.random.uniform(nxt(), (input_dim, hidden_dim), jnp.float32, -b, b)
    p["sage1_b"] = jax.random.uniform(nxt(), (1, hidden_dim), jnp.float32, -b, b)
    p["bn1_gamma"] = 1.0 + 0.1 * jax.random.normal(nxt(), (1, hidden_dim), jnp.float32)
    p["bn1_beta"] = 0.1 * jax.random.normal(nxt(), (1, hidden_dim), jnp.float32)
    p["bn1_mean"] = 0.05 * jax.random.normal(nxt(), (1, hidden_dim), jnp.float32)
    p["bn1_var"] = 1.0 + 0.1 * jnp.abs(jax.random.normal(nxt(), (1, hidden_dim), jnp.float32))
    b = 1.0 / (hidden_dim ** 0.5)
    p["sage2_wl"] = jax.random.uniform(nxt(), (hidden_dim, output_dim), jnp.float32, -b, b)
    p["sage2_wr"] = jax.random.uniform(nxt(), (hidden_dim, output_dim), jnp.float32, -b, b)
    p["sage2_b"] = jax.random.uniform(nxt(), (1, output_dim), jnp.float32, -b, b)
    p["bn2_gamma"] = 1.0 + 0.1 * jax.random.normal(nxt(), (1, output_dim), jnp.float32)
    p["bn2_beta"] = 0.1 * jax.random.normal(nxt(), (1, output_dim), jnp.float32)
    p["bn2_mean"] = 0.05 * jax.random.normal(nxt(), (1, output_dim), jnp.float32)
    p["bn2_var"] = 1.0 + 0.1 * jnp.abs(jax.random.normal(nxt(), (1, output_dim), jnp.float32))
    b = 1.0 / (output_dim ** 0.5)
    p["gat_w"] = jax.random.uniform(nxt(), (heads, output_dim, output_dim), jnp.float32, -b, b)
    p["gat_att_src"] = jax.random.uniform(nxt(), (heads, output_dim), jnp.float32, -b, b)
    p["gat_att_dst"] = jax.random.uniform(nxt(), (heads, output_dim), jnp.float32, -b, b)
    p["gat_b"] = jax.random.uniform(nxt(), (1, output_dim), jnp.float32, -b, b)
    return p


# ----------------------------------------------------------------------------
# One-time preprocessing (hoisted out of the hot path): dense graph operators,
# eval-BN fold, GAT attention pre-contraction, weight packing, bf16 casts.
# ----------------------------------------------------------------------------
def _dense_graph(edge_index, num_nodes):
    """edge_index (2, E) -> mean-aggregation matrix (bf16) and additive GAT mask (f32)."""
    src, dst = edge_index[0], edge_index[1]
    counts = jnp.zeros((num_nodes, num_nodes), jnp.float32).at[dst, src].add(1.0)
    deg = jnp.sum(counts, axis=1, keepdims=True)
    a_mean = counts / jnp.maximum(deg, 1.0)               # row i: mean over in-neighbors j->i
    eye = jnp.eye(num_nodes, dtype=jnp.float32)
    adj = jnp.maximum(jnp.minimum(counts, 1.0), eye)      # binary adjacency + self loops
    mask_add = jnp.where(adj > 0, 0.0, NEG_INF).astype(jnp.float32)
    return a_mean.astype(jnp.bfloat16), mask_add


def prepare(params, edge_index, num_nodes):
    """Run once per graph/params; returns packed kernel inputs + static dims."""
    d_in = params["sage1_wl"].shape[0]
    d_hid = params["sage1_wl"].shape[1]
    d_out = params["gat_b"].shape[1]
    heads = params["gat_w"].shape[0]
    assert d_hid == d_out, "weight packing assumes hidden_dim == output_dim (default config)"

    # Fold eval-mode BatchNorm into the SAGE weights/biases (exact).
    s1 = params["bn1_gamma"] * jax.lax.rsqrt(params["bn1_var"] + BN_EPS)
    t1 = params["bn1_beta"] - params["bn1_mean"] * s1
    s2 = params["bn2_gamma"] * jax.lax.rsqrt(params["bn2_var"] + BN_EPS)
    t2 = params["bn2_beta"] - params["bn2_mean"] * s2

    # Fuse SAGE lin_l / lin_r into one stacked weight per layer.
    w1_cat = jnp.concatenate([params["sage1_wl"] * s1, params["sage1_wr"] * s1], axis=0)
    b1 = params["sage1_b"] * s1 + t1
    w2_cat = jnp.concatenate([params["sage2_wl"] * s2, params["sage2_wr"] * s2], axis=0)
    b2 = params["sage2_b"] * s2 + t2

    # GAT attention pre-contraction:  a . (h2 @ W_h) == (W_h @ a) . h2
    vdst = jnp.einsum("hio,ho->hi", params["gat_w"], params["gat_att_dst"])   # (H, E)
    vsrc = jnp.einsum("hio,ho->hi", params["gat_w"], params["gat_att_src"])   # (H, E)
    vatt = jnp.concatenate([vdst, vsrc], axis=0).astype(jnp.bfloat16)         # (2H, E)

    # Head-stacked output weight, pre-scaled by 1/H (concat=False -> mean over heads).
    wg_stack = jnp.concatenate([params["gat_w"][h] for h in range(heads)], axis=0) / heads

    # Pack all 128-lane matmul weights into one bf16 stack; pack the three f32 biases.
    w_pack = jnp.concatenate([wg_stack, w2_cat, w1_cat], axis=0).astype(jnp.bfloat16)
    b_pack = jnp.concatenate([b1, b2, params["gat_b"]], axis=0).astype(jnp.float32)  # (3, out)

    a_mean, mask_add = _dense_graph(edge_index, num_nodes)
    packed = {"a_mean": a_mean, "mask_add": mask_add,
              "w_pack": w_pack, "vatt": vatt, "b_pack": b_pack}
    dims = (heads, d_in, d_hid, d_out)
    return packed, dims


# ----------------------------------------------------------------------------
# Hot path: one pallas_call, 6 VMEM-resident inputs
# ----------------------------------------------------------------------------
@functools.partial(jax.jit, static_argnames=("dims",))
def graph_network_forward(x, a_mean, mask_add, w_pack, vatt, b_pack, dims):
    heads, d_in, d_hid, d_out = dims
    kernel = functools.partial(_graphnet_kernel,
                               heads=heads, d_in=d_in, d_hid=d_hid, d_out=d_out)
    vmem = pl.BlockSpec(memory_space=pltpu.MemorySpace.VMEM)
    return pl.pallas_call(
        kernel,
        out_shape=jax.ShapeDtypeStruct((1, d_out), jnp.float32),
        in_specs=[vmem] * 6,
        out_specs=vmem,
    )(x.astype(jnp.bfloat16), a_mean, mask_add, w_pack, vatt, b_pack)


# ----------------------------------------------------------------------------
# Plain-JAX reference (same packed math / same bf16 MXU operands) for checking
# ----------------------------------------------------------------------------
def _reference_forward(x, packed, dims):
    heads, d_in, d_hid, d_out = dims
    f32, bf16 = jnp.float32, jnp.bfloat16
    xb = x.astype(bf16)
    a_mean, mask = packed["a_mean"], packed["mask_add"]
    w, b, vatt = packed["w_pack"], packed["b_pack"], packed["vatt"]
    r_wg, r_w2 = heads * d_out, 2 * d_hid
    wg, w2, w1 = w[0:r_wg], w[r_wg:r_wg + r_w2], w[r_wg + r_w2:r_wg + r_w2 + 2 * d_in]
    b1, b2, bg = b[0:1], b[1:2], b[2:3]

    agg = jnp.dot(a_mean, xb, preferred_element_type=f32)
    h = jnp.maximum(jnp.dot(jnp.concatenate([agg.astype(bf16), xb], -1), w1,
                            preferred_element_type=f32) + b1, 0.0).astype(bf16)
    agg2 = jnp.dot(a_mean, h, preferred_element_type=f32)
    h2 = jnp.maximum(jnp.dot(jnp.concatenate([agg2.astype(bf16), h], -1), w2,
                             preferred_element_type=f32) + b2, 0.0).astype(bf16)
    att = jax.lax.dot_general(vatt, h2, (((1,), (1,)), ((), ())), preferred_element_type=f32)
    sd, ss = att[0:heads], att[heads:2 * heads]
    logits = sd[:, :, None] + ss[:, None, :]
    logits = jnp.where(logits > 0, logits, LEAKY_SLOPE * logits) + mask[None, :, :]
    m = jnp.max(logits, axis=-1, keepdims=True)
    p = jnp.exp(logits - m)
    alpha = (p / jnp.sum(p, axis=-1, keepdims=True)).astype(bf16)
    mh = [jnp.dot(alpha[hd], h2, preferred_element_type=f32).astype(bf16) for hd in range(heads)]
    out = jnp.dot(jnp.concatenate(mh, -1), wg, preferred_element_type=f32) + bg
    out = jnp.maximum(out, 0.0)
    return jnp.sum(out, axis=0, keepdims=True) * (1.0 / x.shape[0])


def _build_edge_index(n):
    """Deterministic graph: bidirectional ring + chords i -> (i+4) % n. No duplicates/self-loops."""
    src, dst = [], []
    for i in range(n):
        src += [i, (i + 1) % n, i]
        dst += [(i + 1) % n, i, (i + 4) % n]
    return jnp.array([src, dst], dtype=jnp.int32)


if __name__ == "__main__":
    key = jax.random.PRNGKey(0)
    k_param, k_x = jax.random.split(key)

    NUM_NODES, INPUT_DIM = 16, 32
    params = init_params(k_param, INPUT_DIM)
    x = jax.random.normal(k_x, (NUM_NODES, INPUT_DIM), jnp.float32)
    edge_index = _build_edge_index(NUM_NODES)

    # One-time preprocessing (dense graph + BN fold + packing), hoisted out of hot path.
    packed, dims = prepare(params, edge_index, NUM_NODES)

    out = graph_network_forward(x, packed["a_mean"], packed["mask_add"],
                                packed["w_pack"], packed["vatt"], packed["b_pack"], dims)
    out = jax.block_until_ready(out)

    ref = _reference_forward(x, packed, dims)
    assert out.shape == (1, DEFAULT_EMBEDDING_DIM), out.shape
    assert jnp.all(jnp.isfinite(out))
    err = float(jnp.max(jnp.abs(out - ref)))
    assert jnp.allclose(out, ref, atol=1e-2, rtol=1e-2), err

    print("KERNEL_OK")
</pallas_src>

<mosaic_0001>
module attributes {stable_mosaic.version = 11 : i64} {
  func.func @_graphnet_kernel(%arg0: memref<16x32xbf16, #tpu.memory_space<vmem>>, %arg1: memref<16x16xbf16, #tpu.memory_space<vmem>>, %arg2: memref<16x16xf32, #tpu.memory_space<vmem>>, %arg3: memref<832x128xbf16, #tpu.memory_space<vmem>>, %arg4: memref<8x128xbf16, #tpu.memory_space<vmem>>, %arg5: memref<3x128xf32, #tpu.memory_space<vmem>>, %arg6: memref<1x128xf32, #tpu.memory_space<vmem>>) attributes {dimension_semantics = [], scalar_prefetch = 0 : i64, scratch_operands = 0 : i64, tpu.core_type = #tpu.core_type<tc>} {
    %c0 = arith.constant 0 : index
    %c0_0 = arith.constant 0 : index
    %0 = vector.load %arg0[%c0, %c0_0] : memref<16x32xbf16, #tpu.memory_space<vmem>>, vector<16x32xbf16>
    %c0_1 = arith.constant 0 : index
    %c0_2 = arith.constant 0 : index
    %1 = vector.load %arg1[%c0_1, %c0_2] : memref<16x16xbf16, #tpu.memory_space<vmem>>, vector<16x16xbf16>
    %c0_3 = arith.constant 0 : index
    %c0_4 = arith.constant 0 : index
    %2 = vector.load %arg2[%c0_3, %c0_4] : memref<16x16xf32, #tpu.memory_space<vmem>>, vector<16x16xf32>
    %c0_5 = arith.constant 0 : index
    %c0_6 = arith.constant 0 : index
    %3 = vector.load %arg3[%c0_5, %c0_6] : memref<832x128xbf16, #tpu.memory_space<vmem>>, vector<512x128xbf16>
    %c512 = arith.constant 512 : index
    %c0_7 = arith.constant 0 : index
    %4 = vector.load %arg3[%c512, %c0_7] : memref<832x128xbf16, #tpu.memory_space<vmem>>, vector<256x128xbf16>
    %c768 = arith.constant 768 : index
    %c0_8 = arith.constant 0 : index
    %5 = vector.load %arg3[%c768, %c0_8] : memref<832x128xbf16, #tpu.memory_space<vmem>>, vector<64x128xbf16>
    %c0_9 = arith.constant 0 : index
    %c0_10 = arith.constant 0 : index
    %6 = vector.load %arg5[%c0_9, %c0_10] : memref<3x128xf32, #tpu.memory_space<vmem>>, vector<1x128xf32>
    %c1 = arith.constant 1 : index
    %c0_11 = arith.constant 0 : index
    %7 = vector.load %arg5[%c1, %c0_11] : memref<3x128xf32, #tpu.memory_space<vmem>>, vector<1x128xf32>
    %c2 = arith.constant 2 : index
    %c0_12 = arith.constant 0 : index
    %8 = vector.load %arg5[%c2, %c0_12] : memref<3x128xf32, #tpu.memory_space<vmem>>, vector<1x128xf32>
    %cst = arith.constant dense<0.000000e+00> : vector<16x32xf32>
    %9 = tpu.matmul %1, %0, %cst {dimension_numbers = #tpu.dot_dimension_numbers<[1], [0], [0], [1], [0, 0, 1, 1], [], []>} : vector<16x16xbf16>, vector<16x32xbf16>, vector<16x32xf32> -> vector<16x32xf32>
    %10 = arith.truncf %9 : vector<16x32xf32> to vector<16x32xbf16>
    %11 = tpu.concatenate %10, %0 in 1 : vector<16x32xbf16>, vector<16x32xbf16> -> vector<16x64xbf16>
    %cst_13 = arith.constant dense<0.000000e+00> : vector<16x128xf32>
    %12 = tpu.matmul %11, %5, %cst_13 {dimension_numbers = #tpu.dot_dimension_numbers<[1], [0], [0], [1], [0, 0, 1, 1], [], []>} : vector<16x64xbf16>, vector<64x128xbf16>, vector<16x128xf32> -> vector<16x128xf32>
    %13 = vector.broadcast %6 : vector<1x128xf32> to vector<16x128xf32>
    %14 = arith.addf %12, %13 : vector<16x128xf32>
    %cst_14 = arith.constant 0.000000e+00 : f32
    %15 = vector.broadcast %cst_14 : f32 to vector<16x128xf32>
    %16 = arith.maximumf %14, %15 : vector<16x128xf32>
    %17 = arith.truncf %16 : vector<16x128xf32> to vector<16x128xbf16>
    %cst_15 = arith.constant dense<0.000000e+00> : vector<16x128xf32>
    %18 = tpu.matmul %1, %17, %cst_15 {dimension_numbers = #tpu.dot_dimension_numbers<[1], [0], [0], [1], [0, 0, 1, 1], [], []>} : vector<16x16xbf16>, vector<16x128xbf16>, vector<16x128xf32> -> vector<16x128xf32>
    %19 = arith.truncf %18 : vector<16x128xf32> to vector<16x128xbf16>
    %20 = tpu.concatenate %19, %17 in 1 : vector<16x128xbf16>, vector<16x128xbf16> -> vector<16x256xbf16>
    %cst_16 = arith.constant dense<0.000000e+00> : vector<16x128xf32>
    %21 = tpu.matmul %20, %4, %cst_16 {dimension_numbers = #tpu.dot_dimension_numbers<[1], [0], [0], [1], [0, 0, 1, 1], [], []>} : vector<16x256xbf16>, vector<256x128xbf16>, vector<16x128xf32> -> vector<16x128xf32>
    %22 = vector.broadcast %7 : vector<1x128xf32> to vector<16x128xf32>
    %23 = arith.addf %21, %22 : vector<16x128xf32>
    %cst_17 = arith.constant 0.000000e+00 : f32
    %24 = vector.broadcast %cst_17 : f32 to vector<16x128xf32>
    %25 = arith.maximumf %23, %24 : vector<16x128xf32>
    %26 = arith.truncf %25 : vector<16x128xf32> to vector<16x128xbf16>
    %c0_18 = arith.constant 0 : index
    %c0_19 = arith.constant 0 : index
    %27 = vector.load %arg4[%c0_18, %c0_19] : memref<8x128xbf16, #tpu.memory_space<vmem>>, vector<8x128xbf16>
    %cst_20 = arith.constant dense<0.000000e+00> : vector<8x16xf32>
    %28 = tpu.matmul %27, %26, %cst_20 {dimension_numbers = #tpu.dot_dimension_numbers<[1], [1], [0], [0], [0, 0, 1, 0], [], []>} : vector<8x128xbf16>, vector<16x128xbf16>, vector<8x16xf32> -> vector<8x16xf32>
    %29 = vector.extract_strided_slice %28 {offsets = [0, 0], sizes = [4, 16], strides = [1, 1]} : vector<8x16xf32> to vector<4x16xf32>
    %30 = vector.extract_strided_slice %28 {offsets = [4, 0], sizes = [4, 16], strides = [1, 1]} : vector<8x16xf32> to vector<4x16xf32>
    %31 = vector.shape_cast %29 : vector<4x16xf32> to vector<4x16x1xf32>
    %32 = vector.shape_cast %30 : vector<4x16xf32> to vector<4x1x16xf32>
    %33 = vector.broadcast %31 : vector<4x16x1xf32> to vector<4x16x16xf32>
    %34 = vector.broadcast %32 : vector<4x1x16xf32> to vector<4x16x16xf32>
    %35 = arith.addf %33, %34 : vector<4x16x16xf32>
    %cst_21 = arith.constant 0.000000e+00 : f32
    %36 = vector.broadcast %cst_21 : f32 to vector<4x16x16xf32>
    %37 = arith.cmpf ogt, %35, %36 : vector<4x16x16xf32>
    %cst_22 = arith.constant 2.000000e-01 : f32
    %38 = vector.broadcast %cst_22 : f32 to vector<4x16x16xf32>
    %39 = arith.mulf %38, %35 : vector<4x16x16xf32>
    %40 = arith.select %37, %35, %39 : vector<4x16x16xi1>, vector<4x16x16xf32>
    %41 = vector.shape_cast %2 : vector<16x16xf32> to vector<1x16x16xf32>
    %42 = vector.broadcast %41 : vector<1x16x16xf32> to vector<4x16x16xf32>
    %43 = arith.addf %40, %42 : vector<4x16x16xf32>
    %cst_23 = arith.constant dense<0xFF800000> : vector<4x16xf32>
    %44 = vector.multi_reduction <maximumf>, %43, %cst_23 [2] : vector<4x16x16xf32> to vector<4x16xf32>
    %45 = vector.shape_cast %44 : vector<4x16xf32> to vector<4x16x1xf32>
    %46 = vector.broadcast %45 : vector<4x16x1xf32> to vector<4x16x16xf32>
    %47 = arith.subf %43, %46 : vector<4x16x16xf32>
    %48 = math.exp %47 : vector<4x16x16xf32>
    %cst_24 = arith.constant dense<0.000000e+00> : vector<4x16xf32>
    %49 = vector.multi_reduction <add>, %48, %cst_24 [2] : vector<4x16x16xf32> to vector<4x16xf32>
    %50 = vector.shape_cast %49 : vector<4x16xf32> to vector<4x16x1xf32>
    %51 = tpu.reciprocal %50 {approx = true} : vector<4x16x1xf32> -> vector<4x16x1xf32>
    %52 = vector.broadcast %51 : vector<4x16x1xf32> to vector<4x16x16xf32>
    %53 = arith.mulf %48, %52 : vector<4x16x16xf32>
    %54 = arith.truncf %53 : vector<4x16x16xf32> to vector<4x16x16xbf16>
    %55 = vector.extract_strided_slice %54 {offsets = [0, 0, 0], sizes = [1, 16, 16], strides = [1, 1, 1]} : vector<4x16x16xbf16> to vector<1x16x16xbf16>
    %56 = vector.shape_cast %55 : vector<1x16x16xbf16> to vector<16x16xbf16>
    %cst_25 = arith.constant dense<0.000000e+00> : vector<16x128xf32>
    %57 = tpu.matmul %56, %26, %cst_25 {dimension_numbers = #tpu.dot_dimension_numbers<[1], [0], [0], [1], [0, 0, 1, 1], [], []>} : vector<16x16xbf16>, vector<16x128xbf16>, vector<16x128xf32> -> vector<16x128xf32>
    %58 = arith.truncf %57 : vector<16x128xf32> to vector<16x128xbf16>
    %59 = vector.extract_strided_slice %54 {offsets = [1, 0, 0], sizes = [1, 16, 16], strides = [1, 1, 1]} : vector<4x16x16xbf16> to vector<1x16x16xbf16>
    %60 = vector.shape_cast %59 : vector<1x16x16xbf16> to vector<16x16xbf16>
    %cst_26 = arith.constant dense<0.000000e+00> : vector<16x128xf32>
    %61 = tpu.matmul %60, %26, %cst_26 {dimension_numbers = #tpu.dot_dimension_numbers<[1], [0], [0], [1], [0, 0, 1, 1], [], []>} : vector<16x16xbf16>, vector<16x128xbf16>, vector<16x128xf32> -> vector<16x128xf32>
    %62 = arith.truncf %61 : vector<16x128xf32> to vector<16x128xbf16>
    %63 = vector.extract_strided_slice %54 {offsets = [2, 0, 0], sizes = [1, 16, 16], strides = [1, 1, 1]} : vector<4x16x16xbf16> to vector<1x16x16xbf16>
    %64 = vector.shape_cast %63 : vector<1x16x16xbf16> to vector<16x16xbf16>
    %cst_27 = arith.constant dense<0.000000e+00> : vector<16x128xf32>
    %65 = tpu.matmul %64, %26, %cst_27 {dimension_numbers = #tpu.dot_dimension_numbers<[1], [0], [0], [1], [0, 0, 1, 1], [], []>} : vector<16x16xbf16>, vector<16x128xbf16>, vector<16x128xf32> -> vector<16x128xf32>
    %66 = arith.truncf %65 : vector<16x128xf32> to vector<16x128xbf16>
    %67 = vector.extract_strided_slice %54 {offsets = [3, 0, 0], sizes = [1, 16, 16], strides = [1, 1, 1]} : vector<4x16x16xbf16> to vector<1x16x16xbf16>
    %68 = vector.shape_cast %67 : vector<1x16x16xbf16> to vector<16x16xbf16>
    %cst_28 = arith.constant dense<0.000000e+00> : vector<16x128xf32>
    %69 = tpu.matmul %68, %26, %cst_28 {dimension_numbers = #tpu.dot_dimension_numbers<[1], [0], [0], [1], [0, 0, 1, 1], [], []>} : vector<16x16xbf16>, vector<16x128xbf16>, vector<16x128xf32> -> vector<16x128xf32>
    %70 = arith.truncf %69 : vector<16x128xf32> to vector<16x128xbf16>
    %71 = tpu.concatenate %58, %62, %66, %70 in 1 : vector<16x128xbf16>, vector<16x128xbf16>, vector<16x128xbf16>, vector<16x128xbf16> -> vector<16x512xbf16>
    %cst_29 = arith.constant dense<0.000000e+00> : vector<16x128xf32>
    %72 = tpu.matmul %71, %3, %cst_29 {dimension_numbers = #tpu.dot_dimension_numbers<[1], [0], [0], [1], [0, 0, 1, 1], [], []>} : vector<16x512xbf16>, vector<512x128xbf16>, vector<16x128xf32> -> vector<16x128xf32>
    %73 = vector.broadcast %8 : vector<1x128xf32> to vector<16x128xf32>
    %74 = arith.addf %72, %73 : vector<16x128xf32>
    %cst_30 = arith.constant 0.000000e+00 : f32
    %75 = vector.broadcast %cst_30 : f32 to vector<16x128xf32>
    %76 = arith.maximumf %74, %75 : vector<16x128xf32>
    %cst_31 = arith.constant dense<0.000000e+00> : vector<128xf32>
    %77 = vector.multi_reduction <add>, %76, %cst_31 [0] : vector<16x128xf32> to vector<128xf32>
    %78 = vector.shape_cast %77 : vector<128xf32> to vector<1x128xf32>
    %cst_32 = arith.constant 6.250000e-02 : f32
    %79 = vector.broadcast %cst_32 : f32 to vector<1x128xf32>
    %80 = arith.mulf %78, %79 : vector<1x128xf32>
    %c0_33 = arith.constant 0 : index
    %c0_34 = arith.constant 0 : index
    %81 = vector.load %arg6[%c0_33, %c0_34] : memref<1x128xf32, #tpu.memory_space<vmem>>, vector<1x128xf32>
    tpu.vector_store %arg6[%c0_33, %c0_34], %80 {strides = array<i32>} : memref<1x128xf32, #tpu.memory_space<vmem>>, vector<1x128xf32>,
    return
  }
}

</mosaic_0001>

<bundles_post_ra>
// kernel: graph_network_forward.1
= control target key start
LH: loop header
LB: loop body
LE: loop exit
PB: predicated region body
PF: predicated region fallthrough
CT: control target
= control target key end

     0   :  { %11 = vsyncpa [#allocation3], 0  ;;  %s1715_s0 = inlined_call_operand.vmem [shape: bf16[16,32], index: 0, kind: input, shape index: {}]   ;;  %s1716_s1 = inlined_call_operand.vmem [shape: bf16[16,16], index: 1, kind: input, shape index: {}]   ;;  %s1717_s2 = inlined_call_operand.vmem [shape: f32[16,16], index: 2, kind: input, shape index: {}]   ;;  %s1718_s3 = inlined_call_operand.hbm [shape: bf16[832,128], index: 3, kind: input, shape index: {}]   ;;  %s1719_s4 = inlined_call_operand.vmem [shape: bf16[8,128], index: 4, kind: input, shape index: {}]   ;;  %s1720_s5 = inlined_call_operand.vmem [shape: f32[3,128], index: 5, kind: input, shape index: {}]   ;;  %s1721_s6 = inlined_call_operand.hbm [shape: f32[1,128], index: 6, kind: output, shape index: {}]  }
   0x1   :  { %12 = vsyncpa [#allocation4], 0  ;;  %s1568_s21 = smov [#allocation2]   ;;  %s1520_s25 = scalar_lea.hbm %s1718_s3, 6656 }
   0x2   :  { %s24_s22 = sshll.u32 %s1568_s21, 4  ;;  %p1521_p0 = scmp.ne.s32.totalorder %s1718_s3, %s1520_s25  ;;  %s25_s22 = int_to_ptr.vmem [resolvable:$true] %s24_s22 }
   0x3   :  { %p1524_p1 = scmp.lt.u32.totalorder %s1520_s25, %s1718_s3 }
   0x5   :  { %p1526_p2 = pnand %p1524_p1, %p1521_p0 }
   0x7   :  { %1529 = shalt.err (!%p1526_p2)
}
   0x8   :  { %s1530_s30 = scalar_lea.vmem %s25_s22, 6656  ;;  %p1535_p4 = scmp.lt.s32.totalorder %s25_s22, %s25_s22 }
   0x9   :  { %p1531_p3 = scmp.ne.s32.totalorder %s25_s22, %s1530_s30  ;;  %p1536_p5 = scmp.lt.s32.totalorder %s1530_s30, %s1530_s30 }
   0xb   :  { %p1537_p6 = por %p1536_p5, %p1535_p4 }
   0xd   :  { %p1538_p7 = pnand %p1537_p6, %p1531_p3 }
   0xf   :  { %1541 = shalt.err (!%p1538_p7)
}
  0x10   :  { %s1569_s7 = smov 64   ;;  %s1570_s8 = smov 4  }
  0x11   :  { %30 = dma.hbm_to_vmem [thread:$0]  %s1718_s3, 6656, %s25_s22, [#allocation3], %s1569_s7, %s1569_s7, %s1570_s8  }
  0x12   :  { %1564 = dma.done.wait [#allocation3], 6656  }
  0x13   :  { %1565 = vsyncadd [#allocation3], 4294960640  ;;  %v1571_v0 = vmov 0.0   ;;  %vm1572_vm0 = vmmov 0   ;;  %v1434_v1 = vld [vmem:[%s1715_s0] sm:$0xff]   ;;  %vm163_vm1 = vcmask 130048   ;;  %v517_v58 = vlaneseq }
  0x14   :  { %1372 = vmatprep.subr.bf16.mxu0 %v1571_v0  ;;  %1374 = vmatprep.mubr.msk.bf16.mxu0 %vm1572_vm0, %v1571_v0  ;;  %v1435_v2 = vld [vmem:[%s1716_s1] sm:$0xff]   ;;  %s1573_s14 = smov 32   ;;  %v1436_v3 = vld [vmem:[#allocation2 + $0x180] sm:$0xff]   ;;  %v1437_v4 = vld [vmem:[#allocation2 + $0x188] sm:$0xff]   ;;  %vm211_vm2 = vcmask 261120   ;;  %vm243_vm3 = vcmask 523264  }
  0x15   :  { %1378 = vmatprep.subr.bf16.mxu1 %v1571_v0  ;;  %1386 = vmatprep.mubr.msk.bf16.mxu1 %vm1572_vm0, %v1571_v0  ;;  %v1438_v5 = vld [vmem:[#allocation2 + $0x190] sm:$0xff]   ;;  %v1439_v6 = vld [vmem:[#allocation2 + $0x198] sm:$0xff]   ;;  %v1440_v23 = vld [vmem:[#allocation2 + $0x140] sm:$0xff]   ;;  %v1574_v59 = vmov 1966171168   ;;  %v518_v61 = vshrl.u32 %v517_v58, 7 }
  0x16   :  { %1373 = vmatpush3.bf16.msra.mxu0 %v1434_v1  ;;  %209 = vrot.lane.b32.xlu0 %v1434_v1, %s1573_s14  ;;  %v1226_v14 = vld [vmem:[%s1720_s5] ss:$0 sm:$0xff]  ;;  %v1441_v25 = vld [vmem:[#allocation2 + $0x100] sm:$0xff]   ;;  %v1442_v26 = vld [vmem:[#allocation2 + $0x148] sm:$0xff]   ;;  %v564_v60 = vunpack.c.l.s4 %v1574_v59  ;;  %s1575_s23 = smov [#allocation5]  }
  0x17   :  { %1390 = vmatprep.subr.bf16.mxu0 %v1571_v0  ;;  %1379 = vmatpush3.bf16.msra.mxu1 %v1436_v3  ;;  %v1443_v27 = vld [vmem:[#allocation2 + $0x108] sm:$0xff]   ;;  %v1444_v28 = vld [vmem:[#allocation2 + $0x150] sm:$0xff]   ;;  %v1446_v30 = vld [vmem:[#allocation2 + $0x158] sm:$0xff]   ;;  %v519_v63 = vsub.s32 0, %v518_v61 }
  0x18   :  { %1380 = vmatprep.subr.bf16.mxu1 %v1571_v0  ;;  %v1445_v29 = vld [vmem:[#allocation2 + $0x110] sm:$0xff]   ;;  %v1447_v31 = vld [vmem:[#allocation2 + $0x118] sm:$0xff]   ;;  %v1448_v32 = vld [vmem:[#allocation2 + $0x160] sm:$0xff]   ;;  %v565_v62 = vunpack.c.0.s8 %v564_v60 }
  0x19   :  { %1375 = vmatmul.mubr.msk.bf16.vlgmr.msra.gmra.mrb[0].mxu0 %vm163_vm1, %v1435_v2  ;;  %v1449_v33 = vld [vmem:[#allocation2 + $0x120] sm:$0xff]   ;;  %v1450_v34 = vld [vmem:[#allocation2 + $0x168] sm:$0xff]   ;;  %v1452_v36 = vld [vmem:[#allocation2 + $0x170] sm:$0xff]  }
  0x1a   :  { %1392 = vmatprep.mubr.msk.bf16.mxu0 %vm1572_vm0, %v1571_v0  ;;  %v1451_v35 = vld [vmem:[#allocation2 + $0x128] sm:$0xff]   ;;  %v1453_v37 = vld [vmem:[#allocation2 + $0x130] sm:$0xff]   ;;  %v1454_v38 = vld [vmem:[#allocation2 + $0x178] sm:$0xff]  }
  0x1b   :  { %1381 = vmatpush3.bf16.msra.mxu1 %v1437_v4  ;;  %v1455_v39 = vld [vmem:[#allocation2 + $0x138] sm:$0xff]   ;;  %v1233_v46 = vld [vmem:[%s1720_s5 + $0x1] ss:$0 sm:$0xff] }
  0x1c   :  { %1382 = vmatprep.subr.bf16.mxu1 %v1571_v0  ;;  %v476_v57 = vld [vmem:[%s1719_s4] sm:$0xf] }
  0x1f   :  { %1383 = vmatpush3.bf16.msra.mxu1 %v1438_v5  ;;  %v530_v5 = vsub.s32 1, %v518_v61 }
  0x20   :  { %1384 = vmatprep.subr.bf16.mxu1 %v1571_v0 }
  0x23   :  { %1385 = vmatpush3.bf16.msra.mxu1 %v1439_v6 }
  0x24   :  { %1396 = vmatprep.subr.bf16.mxu1 %v1571_v0 }
  0x88   :  { %v210_v10 = vpop.permute.xlu0 %209 }
  0xec   :  { %v201_v7 = vpop.f32.mrb[0].mxu0 }
  0xed   :  { %v1376_v8 = vpop.f32.mrb[1].mxu0 }
  0xee   :  { %v204_v9 = vpop.f32.mrb[2].mxu0 }
  0xef   :  { %v208_v11 = vpack.c.bf16 %v204_v9, %v201_v7  ;;  %v1377_v12 = vpop.f32.mrb[3].mxu0 }
  0xf1   :  { %v214_v13 = vsel %vm211_vm2, %v208_v11, %v210_v10  ;;  %v552_v11 = vsub.s32 3, %v518_v61 }
  0xf2   :  { %1387 = vmatmul.mubr.msk.bf16.vlgmr.msra.gmra.mrb[0].mxu1 %vm243_vm3, %v214_v13 }
  0xf3   :  { %1398 = vmatprep.mubr.msk.bf16.mxu1 %vm1572_vm0, %v1571_v0 }
 0x1c5   :  { %v280_v15 = vpop.f32.mrb[0].mxu1 }
 0x1c6   :  { %v281_v16 = vadd.f32 %v1226_v14, %v280_v15  ;;  %v1388_v17 = vpop.f32.mrb[1].mxu1 }
 0x1c7   :  { %v283_v18 = vpop.f32.mrb[2].mxu1 }
 0x1c8   :  { %v284_v19 = vadd.f32 %v1226_v14, %v283_v18  ;;  %v1389_v20 = vpop.f32.mrb[3].mxu1  ;;  %v287_v21 = vmax.f32 %v281_v16, 0.0  ;;  %v541_v18 = vsub.s32 2, %v518_v61 }
 0x1ca   :  { %v288_v22 = vmax.f32 %v284_v19, 0.0 }
 0x1cc   :  { %v289_v24 = vpack.c.bf16 %v288_v22, %v287_v21 }
 0x1ce   :  { %1391 = vmatpush3.bf16.msra.mxu0 %v289_v24 }
 0x1cf   :  { %1296 = vmatprep.subr.bf16.mxu0 %v1440_v23 }
 0x1d1   :  { %1393 = vmatmul.mubr.msk.bf16.vlgmr.msra.gmra.mrb[4].mxu0 %vm163_vm1, %v1435_v2  ;;  %v568_v2 = vsub.s32 %v565_v62, %v518_v61 }
 0x1d2   :  { %464 = vmatprep.mubr.bf16.mxu0 %v289_v24  ;;  %1297 = vmatpush3.bf16.msra.mxu0 %v1441_v25 }
 0x1d3   :  { %1298 = vmatprep.subr.bf16.mxu0 %v1442_v26 }
 0x1d6   :  { %1299 = vmatpush3.bf16.msra.mxu0 %v1443_v27 }
 0x1d7   :  { %1300 = vmatprep.subr.bf16.mxu0 %v1444_v28  ;;  %v44_v28 = vld [vmem:[%s1717_s2 + $0x8] sm:$0xff] }
 0x1da   :  { %1301 = vmatpush3.bf16.msra.mxu0 %v1445_v29  ;;  %v43_v29 = vld [vmem:[%s1717_s2] sm:$0xff] }
 0x1db   :  { %1302 = vmatprep.subr.bf16.mxu0 %v1446_v30 }
 0x1de   :  { %1303 = vmatpush3.bf16.msra.mxu0 %v1447_v31 }
 0x1df   :  { %1304 = vmatprep.subr.bf16.mxu0 %v1448_v32 }
 0x1e2   :  { %1305 = vmatpush3.bf16.msra.mxu0 %v1449_v33 }
 0x1e3   :  { %1306 = vmatprep.subr.bf16.mxu0 %v1450_v34 }
 0x1e6   :  { %1307 = vmatpush3.bf16.msra.mxu0 %v1451_v35 }
 0x1e7   :  { %1308 = vmatprep.subr.bf16.mxu0 %v1452_v36 }
 0x1ea   :  { %1309 = vmatpush3.bf16.msra.mxu0 %v1453_v37 }
 0x1eb   :  { %1310 = vmatprep.subr.bf16.mxu0 %v1454_v38 }
 0x1ee   :  { %1311 = vmatpush3.bf16.msra.mxu0 %v1455_v39 }
 0x1ef   :  { %1420 = vmatprep.subr.bf16.mxu0 %v1571_v0 }
 0x2a4   :  { %v324_v40 = vpop.f32.mrb[4].mxu0 }
 0x2a5   :  { %v1394_v41 = vpop.f32.mrb[5].mxu0 }
 0x2a6   :  { %v327_v42 = vpop.f32.mrb[6].mxu0 }
 0x2a7   :  { %v331_v43 = vpack.c.bf16 %v327_v42, %v324_v40  ;;  %v1395_v44 = vpop.f32.mrb[7].mxu0 }
 0x2a9   :  { %465 = vmatmul.mubr.bf16.vlgmr.msra.gmra.mrb[8].mxu0 %v331_v43 }
 0x2aa   :  { %1422 = vmatprep.mubr.msk.bf16.mxu0 %vm1572_vm0, %v1571_v0 }
 0x37c   :  { %v1312_v45 = vpop.f32.mrb[8].mxu0 }
 0x37d   :  { %v1313_v47 = vpop.f32.mrb[9].mxu0 }
 0x37e   :  { %v1314_v48 = vadd.f32 %v1313_v47, %v1312_v45  ;;  %v1315_v49 = vpop.f32.mrb[10].mxu0 }
 0x37f   :  { %v1316_v50 = vpop.f32.mrb[11].mxu0 }
 0x380   :  { %v467_v51 = vadd.f32 %v1314_v48, %v1233_v46  ;;  %v1317_v52 = vadd.f32 %v1316_v50, %v1315_v49 }
 0x382   :  { %v470_v53 = vadd.f32 %v1317_v52, %v1233_v46  ;;  %v473_v54 = vmax.f32 %v467_v51, 0.0 }
 0x384   :  { %v474_v55 = vmax.f32 %v470_v53, 0.0 }
 0x386   :  { %v1655_v56 = vpack.c.bf16 %v474_v55, %v473_v54 }
 0x388   :  { %1397 = vmatpush3.bf16.xpose.msra.mxu1 %v1655_v56  ;;  %1421 = vmatpush3.bf16.msra.mxu0 %v1655_v56 }
 0x389   :  { %1402 = vmatprep.subr.bf16.mxu1 %v1571_v0 }
 0x38f   :  { %1399 = vmatmul.mubr.bf16.vlgmr.msra.gmra.mrb[4].mxu1 %v476_v57 }
 0x390   :  { %1403 = vmatpush3.bf16.msra.mxu1 %v1655_v56  ;;  %1404 = vmatprep.mubr.msk.bf16.mxu1 %vm1572_vm0, %v1571_v0 }
 0x391   :  { %1408 = vmatprep.subr.bf16.mxu1 %v1571_v0 }
 0x462   :  { %v511_v1 = vpop.f32.mrb[4].mxu1 }
 0x463   :  { %v520_v3 = vrot.slane %v511_v1, %v519_v63  ;;  %v1400_v4 = vpop.f32.mrb[5].mxu1  ;;  %v562_v7 = vcombine.high %v511_v1, %v511_v1  ;;  %v531_v10 = vrot.slane %v511_v1, %v530_v5  ;;  %v553_v17 = vrot.slane %v511_v1, %v552_v11 }
 0x464   :  { %v514_v6 = vpop.f32.mrb[6].mxu1  ;;  %v542_v23 = vrot.slane %v511_v1, %v541_v18 }
 0x465   :  { %526 = vbcast.lane.b32.xlu1 %v520_v3, 264  ;;  %522 = vbcast.lane.b32.xlu0 %v520_v3, 256  ;;  %v1401_v8 = vpop.f32.mrb[7].mxu1  ;;  %v569_v9 = vrot.slane %v562_v7, %v568_v2 }
 0x467   :  { %v577_v12 = vrot.slane %v569_v9, %v568_v2  ;;  %v570_v13 = vcombine.high %v569_v9, %v569_v9 }
 0x469   :  { %533 = vbcast.lane.b32.xlu1 %v531_v10, 256  ;;  %537 = vbcast.lane.b32.xlu0 %v531_v10, 264  ;;  %v590_v14 = vrot.slane %v577_v12, %v519_v63  ;;  %v584_v15 = vrot.slane %v570_v13, %v568_v2  ;;  %v585_v16 = vcombine.high %v577_v12, %v577_v12 }
 0x46b   :  { %v594_v19 = vrot.slane %v584_v15, %v519_v63  ;;  %v586_v20 = vcombine.high %v584_v15, %v584_v15  ;;  %v598_v21 = vrot.slane %v585_v16, %v519_v63 }
 0x46d   :  { %555 = vbcast.lane.b32.xlu1 %v553_v17, 256  ;;  %559 = vbcast.lane.b32.xlu0 %v553_v17, 264  ;;  %v602_v22 = vrot.slane %v586_v20, %v519_v63 }
 0x471   :  { %544 = vbcast.lane.b32.xlu1 %v542_v23, 256  ;;  %548 = vbcast.lane.b32.xlu0 %v542_v23, 264 }
 0x4d7   :  { %v527_v24 = vpop.permute.xlu1 %526  ;;  %v523_v25 = vpop.permute.xlu0 %522 }
 0x4d8   :  { %v608_v26 = vadd.f32 %v590_v14, %v527_v24  ;;  %v607_v27 = vadd.f32 %v590_v14, %v523_v25 }
 0x4da   :  { %vm616_vm4 = vcmp.gt.f32.partialorder %v608_v26, 0.0  ;;  %v624_v30 = vmul.f32 0.2, %v608_v26  ;;  %vm615_vm5 = vcmp.gt.f32.partialorder %v607_v27, 0.0  ;;  %v623_v31 = vmul.f32 0.2, %v607_v27 }
 0x4db   :  { %v534_v32 = vpop.permute.xlu1 %533  ;;  %v538_v33 = vpop.permute.xlu0 %537 }
 0x4dc   :  { %v609_v34 = vadd.f32 %v594_v19, %v534_v32  ;;  %v610_v35 = vadd.f32 %v594_v19, %v538_v33  ;;  %v632_v36 = vsel %vm616_vm4, %v608_v26, %v624_v30  ;;  %v631_v37 = vsel %vm615_vm5, %v607_v27, %v623_v31 }
 0x4dd   :  { %v640_v38 = vadd.f32 %v632_v36, %v44_v28  ;;  %v639_v39 = vadd.f32 %v631_v37, %v43_v29 }
 0x4de   :  { %vm617_vm6 = vcmp.gt.f32.partialorder %v609_v34, 0.0  ;;  %v625_v40 = vmul.f32 0.2, %v609_v34  ;;  %vm618_vm7 = vcmp.gt.f32.partialorder %v610_v35, 0.0  ;;  %v626_v41 = vmul.f32 0.2, %v610_v35 }
 0x4df   :  { %v556_v42 = vpop.permute.xlu1 %555  ;;  %v560_v43 = vpop.permute.xlu0 %559  ;;  %v650_v44 = vsel %vm163_vm1, %v640_v38, -inf  ;;  %v647_v45 = vsel %vm163_vm1, %v639_v39, -inf }
 0x4e0   :  { %v613_v46 = vadd.f32 %v602_v22, %v556_v42  ;;  %v614_v47 = vadd.f32 %v602_v22, %v560_v43  ;;  %651 = vmax.xlane.f32.xlu0 %v650_v44  ;;  %648 = vmax.xlane.f32.xlu1 %v647_v45  ;;  %v633_v48 = vsel %vm617_vm6, %v609_v34, %v625_v40 }
 0x4e1   :  { %v641_v49 = vadd.f32 %v633_v48, %v43_v29  ;;  %v634_v50 = vsel %vm618_vm7, %v610_v35, %v626_v41 }
 0x4e2   :  { %vm621_vm8 = vcmp.gt.f32.partialorder %v613_v46, 0.0  ;;  %v629_v51 = vmul.f32 0.2, %v613_v46  ;;  %vm622_vm9 = vcmp.gt.f32.partialorder %v614_v47, 0.0  ;;  %v630_v52 = vmul.f32 0.2, %v614_v47 }
 0x4e3   :  { %v545_v53 = vpop.permute.xlu1 %544  ;;  %v549_v54 = vpop.permute.xlu0 %548  ;;  %v653_v55 = vsel %vm163_vm1, %v641_v49, -inf  ;;  %v642_v57 = vadd.f32 %v634_v50, %v44_v28 }
 0x4e4   :  { %v611_v58 = vadd.f32 %v598_v21, %v545_v53  ;;  %v612_v59 = vadd.f32 %v598_v21, %v549_v54  ;;  %654 = vmax.xlane.f32.xlu0 %v653_v55  ;;  %v637_v60 = vsel %vm621_vm8, %v613_v46, %v629_v51  ;;  %v638_v61 = vsel %vm622_vm9, %v614_v47, %v630_v52  ;;  %v1460_v52 = vld [vmem:[#allocation2 + $0xc0] sm:$0xff]  }
 0x4e5   :  { %v656_v62 = vsel %vm163_vm1, %v642_v57, -inf  ;;  %v645_v63 = vadd.f32 %v637_v60, %v43_v29  ;;  %v646_v1 = vadd.f32 %v638_v61, %v44_v28  ;;  %1350 = vmatprep.subr.bf16.mxu0 %v1460_v52 }
 0x4e6   :  { %vm619_vm10 = vcmp.gt.f32.partialorder %v611_v58, 0.0  ;;  %v627_v2 = vmul.f32 0.2, %v611_v58  ;;  %vm620_vm11 = vcmp.gt.f32.partialorder %v612_v59, 0.0  ;;  %v628_v3 = vmul.f32 0.2, %v612_v59  ;;  %657 = vmax.xlane.f32.xlu1 %v656_v62 }
 0x4e7   :  { %v665_v4 = vsel %vm163_vm1, %v645_v63, -inf  ;;  %v668_v5 = vsel %vm163_vm1, %v646_v1, -inf }
 0x4e8   :  { %666 = vmax.xlane.f32.xlu0 %v665_v4  ;;  %v635_v6 = vsel %vm619_vm10, %v611_v58, %v627_v2  ;;  %v636_v7 = vsel %vm620_vm11, %v612_v59, %v628_v3 }
 0x4e9   :  { %v643_v8 = vadd.f32 %v635_v6, %v43_v29  ;;  %v644_v9 = vadd.f32 %v636_v7, %v44_v28 }
 0x4ea   :  { %669 = vmax.xlane.f32.xlu1 %v668_v5 }
 0x4eb   :  { %v659_v10 = vsel %vm163_vm1, %v643_v8, -inf  ;;  %v662_v11 = vsel %vm163_vm1, %v644_v9, -inf }
 0x4ec   :  { %660 = vmax.xlane.f32.xlu0 %v659_v10 }
 0x4ee   :  { %663 = vmax.xlane.f32.xlu1 %v662_v11 }
 0x56d   :  { %v649_v12 = vpop.xlane.xlu1 %648  ;;  %v652_v13 = vpop.xlane.xlu0 %651 }
 0x56e   :  { %v671_v14 = vsub.f32 %v639_v39, %v649_v12  ;;  %v672_v15 = vsub.f32 %v640_v38, %v652_v13  ;;  %v1456_v13 = vld [vmem:[#allocation2 + $0x40] sm:$0xff]  }
 0x570   :  { %v679_v16 = vmul.f32 1.442695, %v671_v14  ;;  %v681_v17 = vmul.f32 1.442695, %v672_v15 }
 0x571   :  { %v655_v18 = vpop.xlane.xlu0 %654 }
 0x572   :  { %1488 = vpow2.f32 %v679_v16  ;;  %v673_v19 = vsub.f32 %v641_v49, %v655_v18  ;;  %v1462_v16 = vld [vmem:[#allocation2 + $0x80] sm:$0xff]   ;;  %v1464_v18 = vld [vmem:[#allocation2 + $0xc8] sm:$0xff]  }
 0x573   :  { %1490 = vpow2.f32 %v681_v17  ;;  %v658_v20 = vpop.xlane.xlu1 %657 }
 0x574   :  { %v674_v21 = vsub.f32 %v642_v57, %v658_v20  ;;  %v683_v22 = vmul.f32 1.442695, %v673_v19 }
 0x575   :  { %v667_v23 = vpop.xlane.xlu0 %666 }
 0x576   :  { %v685_v24 = vmul.f32 1.442695, %v674_v21  ;;  %1492 = vpow2.f32 %v683_v22  ;;  %v677_v25 = vsub.f32 %v645_v63, %v667_v23  ;;  %v1466_v21 = vld [vmem:[#allocation2 + $0x88] sm:$0xff]   ;;  %v1468_v22 = vld [vmem:[#allocation2 + $0xd0] sm:$0xff]   ;;  %v1457_v23 = vld [vmem:[#allocation2] sm:$0xff]  }
 0x577   :  { %v670_v26 = vpop.xlane.xlu1 %669 }
 0x578   :  { %1494 = vpow2.f32 %v685_v24  ;;  %v678_v27 = vsub.f32 %v646_v1, %v670_v26  ;;  %v691_v28 = vmul.f32 1.442695, %v677_v25  ;;  %v1458_v25 = vld [vmem:[#allocation2 + $0x48] sm:$0xff]   ;;  %v1470_v26 = vld [vmem:[#allocation2 + $0x90] sm:$0xff]  }
 0x579   :  { %v661_v29 = vpop.xlane.xlu0 %660 }
 0x57a   :  { %v693_v30 = vmul.f32 1.442695, %v678_v27  ;;  %1496 = vpow2.f32 %v691_v28  ;;  %v675_v31 = vsub.f32 %v643_v8, %v661_v29  ;;  %v1461_v27 = vld [vmem:[#allocation2 + $0x50] sm:$0xff]   ;;  %v1465_v28 = vld [vmem:[#allocation2 + $0x58] sm:$0xff]  }
 0x57b   :  { %v664_v32 = vpop.xlane.xlu1 %663  ;;  %v1467_v29 = vld [vmem:[#allocation2 + $0x18] sm:$0xff]  }
 0x57c   :  { %v1489_v33 = vpop.eup %1488  ;;  %1498 = vpow2.f32 %v693_v30  ;;  %v676_v34 = vsub.f32 %v644_v9, %v664_v32  ;;  %v687_v35 = vmul.f32 1.442695, %v675_v31  ;;  %v1469_v30 = vld [vmem:[#allocation2 + $0x60] sm:$0xff]   ;;  %v1472_v32 = vld [vmem:[#allocation2 + $0xd8] sm:$0xff]  }
 0x57d   :  { %v1491_v36 = vpop.eup %1490  ;;  %v695_v37 = vsel %vm163_vm1, %v1489_v33, 0.0  ;;  %v1471_v31 = vld [vmem:[#allocation2 + $0x20] sm:$0xff]  }
 0x57e   :  { %v689_v38 = vmul.f32 1.442695, %v676_v34  ;;  %1500 = vpow2.f32 %v687_v35  ;;  %696 = vadd.xlane.f32.xlu0 %v695_v37  ;;  %v698_v39 = vsel %vm163_vm1, %v1491_v36, 0.0  ;;  %v1474_v34 = vld [vmem:[#allocation2 + $0x98] sm:$0xff]   ;;  %v1475_v35 = vld [vmem:[#allocation2 + $0x28] sm:$0xff]   ;;  %v1477_v37 = vld [vmem:[#allocation2 + $0x70] sm:$0xff]  }
 0x57f   :  { %699 = vadd.xlane.f32.xlu1 %v698_v39  ;;  %v1479_v39 = vld [vmem:[#allocation2 + $0x30] sm:$0xff]  }
 0x580   :  { %v1493_v40 = vpop.eup %1492  ;;  %1502 = vpow2.f32 %v689_v38  ;;  %v1478_v38 = vld [vmem:[#allocation2 + $0xa0] sm:$0xff]  }
 0x581   :  { %v701_v41 = vsel %vm163_vm1, %v1493_v40, 0.0 }
 0x582   :  { %v1495_v42 = vpop.eup %1494  ;;  %702 = vadd.xlane.f32.xlu0 %v701_v41  ;;  %v1481_v41 = vld [vmem:[#allocation2 + $0x78] sm:$0xff]  }
 0x583   :  { %v704_v43 = vsel %vm163_vm1, %v1495_v42, 0.0 }
 0x584   :  { %v1497_v44 = vpop.eup %1496  ;;  %705 = vadd.xlane.f32.xlu1 %v704_v43  ;;  %v1483_v43 = vld [vmem:[#allocation2 + $0x38] sm:$0xff]  }
 0x585   :  { %v713_v45 = vsel %vm163_vm1, %v1497_v44, 0.0 }
 0x586   :  { %v1499_v46 = vpop.eup %1498  ;;  %714 = vadd.xlane.f32.xlu0 %v713_v45  ;;  %v1485_v45 = vld [vmem:[#allocation2 + $0xb0] sm:$0xff]  }
 0x587   :  { %v716_v47 = vsel %vm163_vm1, %v1499_v46, 0.0 }
 0x588   :  { %v1501_v48 = vpop.eup %1500  ;;  %717 = vadd.xlane.f32.xlu1 %v716_v47  ;;  %v1487_v47 = vld [vmem:[#allocation2 + $0xb8] sm:$0xff]  }
 0x589   :  { %v707_v49 = vsel %vm163_vm1, %v1501_v48, 0.0 }
 0x58a   :  { %v1503_v50 = vpop.eup %1502  ;;  %708 = vadd.xlane.f32.xlu0 %v707_v49 }
 0x58b   :  { %v710_v51 = vsel %vm163_vm1, %v1503_v50, 0.0 }
 0x58c   :  { %711 = vadd.xlane.f32.xlu1 %v710_v51 }
 0x60b   :  { %v697_v53 = vpop.xlane.xlu0 %696 }
 0x60c   :  { %v700_v54 = vpop.xlane.xlu1 %699  ;;  %1504 = vrcp.f32 %v697_v53 }
 0x60d   :  { %1506 = vrcp.f32 %v700_v54 }
 0x60f   :  { %v703_v55 = vpop.xlane.xlu0 %702 }
 0x610   :  { %1508 = vrcp.f32 %v703_v55 }
 0x611   :  { %v706_v57 = vpop.xlane.xlu1 %705 }
 0x612   :  { %1510 = vrcp.f32 %v706_v57 }
 0x613   :  { %v715_v58 = vpop.xlane.xlu0 %714 }
 0x614   :  { %1512 = vrcp.f32 %v715_v58 }
 0x615   :  { %v718_v59 = vpop.xlane.xlu1 %717 }
 0x616   :  { %v1505_v60 = vpop.eup %1504  ;;  %1514 = vrcp.f32 %v718_v59 }
 0x617   :  { %v1507_v61 = vpop.eup %1506  ;;  %v727_v62 = vmul.f32 %v1505_v60, %v1489_v33  ;;  %v709_v63 = vpop.xlane.xlu0 %708  ;;  %v1473_v33 = vld [vmem:[#allocation2 + $0x68] sm:$0xff]  }
 0x618   :  { %v728_v1 = vmul.f32 %v1507_v61, %v1491_v36  ;;  %1516 = vrcp.f32 %v709_v63  ;;  %v1476_v36 = vld [vmem:[#allocation2 + $0xe0] sm:$0xff]  }
 0x619   :  { %v712_v2 = vpop.xlane.xlu1 %711 }
 0x61a   :  { %1518 = vrcp.f32 %v712_v2  ;;  %v735_v3 = vpack.c.bf16 %v728_v1, %v727_v62  ;;  %v1509_v4 = vpop.eup %1508 }
 0x61b   :  { %v729_v8 = vmul.f32 %v1509_v4, %v1493_v40  ;;  %v1480_v40 = vld [vmem:[#allocation2 + $0xe8] sm:$0xff]  }
 0x61c   :  { %v1511_v5 = vpop.eup %1510  ;;  %1405 = vmatmul.mubr.msk.bf16.vlgmr.msra.gmra.mrb[8].mxu1 %vm163_vm1, %v735_v3 }
 0x61d   :  { %1409 = vmatpush3.bf16.msra.mxu1 %v1655_v56  ;;  %1410 = vmatprep.mubr.msk.bf16.mxu1 %vm1572_vm0, %v1571_v0  ;;  %v730_v7 = vmul.f32 %v1511_v5, %v1495_v42  ;;  %v1482_v42 = vld [vmem:[#allocation2 + $0xa8] sm:$0xff]  }
 0x61e   :  { %v1513_v6 = vpop.eup %1512  ;;  %1414 = vmatprep.subr.bf16.mxu1 %v1571_v0 }
 0x61f   :  { %v733_v9 = vmul.f32 %v1513_v6, %v1497_v44  ;;  %v736_v12 = vpack.c.bf16 %v730_v7, %v729_v8  ;;  %v1484_v44 = vld [vmem:[#allocation2 + $0xf0] sm:$0xff]  }
 0x620   :  { %v1515_v10 = vpop.eup %1514 }
 0x621   :  { %v734_v11 = vmul.f32 %v1515_v10, %v1499_v46  ;;  %v1486_v46 = vld [vmem:[#allocation2 + $0xf8] sm:$0xff]  }
 0x622   :  { %v1517_v14 = vpop.eup %1516 }
 0x623   :  { %v738_v15 = vpack.c.bf16 %v734_v11, %v733_v9  ;;  %v731_v20 = vmul.f32 %v1517_v14, %v1501_v48 }
 0x624   :  { %v1519_v17 = vpop.eup %1518  ;;  %1411 = vmatmul.mubr.msk.bf16.vlgmr.msra.gmra.mrb[12].mxu1 %vm163_vm1, %v736_v12  ;;  %v1254_v12 = vld [vmem:[%s1720_s5 + $0x2] ss:$0 sm:$0xff]  ;;  %s1214_s5 = sshll.u32 %s1575_s23, 4  ;;  %s1215_s5 = int_to_ptr.vmem [resolvable:$true] %s1214_s5 }
 0x625   :  { %1415 = vmatpush3.bf16.msra.mxu1 %v1655_v56  ;;  %1423 = vmatmul.mubr.msk.bf16.vlgmr.msra.gmra.mrb[12].mxu0 %vm163_vm1, %v738_v15  ;;  %v732_v19 = vmul.f32 %v1519_v17, %v1503_v50  ;;  %v1459_v56 = vld [vmem:[#allocation2 + $0x8] sm:$0xff]   ;;  %s1542_s24 = scalar_lea.vmem %s1215_s5, 16  ;;  %s1546_s25 = scalar_lea.vmem %s1215_s5, 32 }
 0x626   :  { %1416 = vmatprep.mubr.msk.bf16.mxu1 %vm1572_vm0, %v1571_v0  ;;  %1328 = vmatprep.subr.bf16.mxu1 %v1456_v13  ;;  %v1463_v0 = vld [vmem:[#allocation2 + $0x10] sm:$0xff]   ;;  %p1543_p8 = scmp.ne.s32.totalorder %s1215_s5, %s1542_s24  ;;  %p1547_p9 = scmp.lt.s32.totalorder %s1215_s5, %s1215_s5 }
 0x627   :  { %1351 = vmatpush3.bf16.msra.mxu0 %v1462_v16  ;;  %v737_v24 = vpack.c.bf16 %v732_v19, %v731_v20  ;;  %p1548_p10 = scmp.lt.s32.totalorder %s1546_s25, %s1542_s24 }
 0x628   :  { %1352 = vmatprep.subr.bf16.mxu0 %v1464_v18 }
 0x629   :  { %p1549_p11 = por %p1548_p10, %p1547_p9 }
 0x62b   :  { %1353 = vmatpush3.bf16.msra.mxu0 %v1466_v21  ;;  %p1550_p12 = pnand %p1549_p11, %p1543_p8 }
 0x62c   :  { %1417 = vmatmul.mubr.msk.bf16.vlgmr.msra.gmra.mrb[16].mxu1 %vm163_vm1, %v737_v24  ;;  %1354 = vmatprep.subr.bf16.mxu0 %v1468_v22 }
 0x62d   :  { %1329 = vmatpush3.bf16.msra.mxu1 %v1457_v23 }
 0x62e   :  { %1330 = vmatprep.subr.bf16.mxu1 %v1458_v25 }
 0x62f   :  { %1355 = vmatpush3.bf16.msra.mxu0 %v1470_v26 }
 0x630   :  { %1356 = vmatprep.subr.bf16.mxu0 %v1472_v32 }
 0x631   :  { %1331 = vmatpush3.bf16.msra.mxu1 %v1459_v56 }
 0x632   :  { %1332 = vmatprep.subr.bf16.mxu1 %v1461_v27 }
 0x633   :  { %1357 = vmatpush3.bf16.msra.mxu0 %v1474_v34 }
 0x634   :  { %1358 = vmatprep.subr.bf16.mxu0 %v1476_v36 }
 0x635   :  { %1333 = vmatpush3.bf16.msra.mxu1 %v1463_v0 }
 0x636   :  { %1334 = vmatprep.subr.bf16.mxu1 %v1465_v28 }
 0x637   :  { %1359 = vmatpush3.bf16.msra.mxu0 %v1478_v38 }
 0x638   :  { %1360 = vmatprep.subr.bf16.mxu0 %v1480_v40 }
 0x639   :  { %1335 = vmatpush3.bf16.msra.mxu1 %v1467_v29 }
 0x63a   :  { %1336 = vmatprep.subr.bf16.mxu1 %v1469_v30 }
 0x63b   :  { %1361 = vmatpush3.bf16.msra.mxu0 %v1482_v42 }
 0x63c   :  { %1362 = vmatprep.subr.bf16.mxu0 %v1484_v44 }
 0x63d   :  { %1337 = vmatpush3.bf16.msra.mxu1 %v1471_v31 }
 0x63e   :  { %1338 = vmatprep.subr.bf16.mxu1 %v1473_v33 }
 0x63f   :  { %1363 = vmatpush3.bf16.msra.mxu0 %v1485_v45 }
 0x640   :  { %1364 = vmatprep.subr.bf16.mxu0 %v1486_v46 }
 0x641   :  { %1339 = vmatpush3.bf16.msra.mxu1 %v1475_v35 }
 0x642   :  { %1340 = vmatprep.subr.bf16.mxu1 %v1477_v37 }
 0x643   :  { %1365 = vmatpush3.bf16.msra.mxu0 %v1487_v47 }
 0x645   :  { %1341 = vmatpush3.bf16.msra.mxu1 %v1479_v39 }
 0x646   :  { %1342 = vmatprep.subr.bf16.mxu1 %v1481_v41 }
 0x649   :  { %1343 = vmatpush3.bf16.msra.mxu1 %v1483_v43 }
 0x6ef   :  { %v776_v48 = vpop.f32.mrb[8].mxu1 }
 0x6f0   :  { %v1406_v49 = vpop.f32.mrb[9].mxu1 }
 0x6f1   :  { %v779_v50 = vpop.f32.mrb[10].mxu1 }
 0x6f2   :  { %v783_v51 = vpack.c.bf16 %v779_v50, %v776_v48  ;;  %v1407_v52 = vpop.f32.mrb[11].mxu1 }
 0x6f7   :  { %v821_v53 = vpop.f32.mrb[12].mxu1 }
 0x6f8   :  { %v911_v54 = vpop.f32.mrb[12].mxu0  ;;  %v1412_v55 = vpop.f32.mrb[13].mxu1 }
 0x6f9   :  { %v1424_v57 = vpop.f32.mrb[13].mxu0  ;;  %v824_v58 = vpop.f32.mrb[14].mxu1 }
 0x6fa   :  { %v828_v59 = vpack.c.bf16 %v824_v58, %v821_v53  ;;  %v914_v60 = vpop.f32.mrb[14].mxu0  ;;  %v1413_v61 = vpop.f32.mrb[15].mxu1 }
 0x6fb   :  { %v918_v62 = vpack.c.bf16 %v914_v60, %v911_v54  ;;  %v1425_v63 = vpop.f32.mrb[15].mxu0 }
 0x6fc   :  { %1147 = vmatprep.mubr.bf16.mxu1 %v828_v59 }
 0x6fd   :  { %1188 = vmatprep.mubr.bf16.mxu0 %v918_v62  ;;  %1148 = vmatmul.mubr.bf16.vlgmr.msra.gmra.mrb[20].mxu1 %v783_v51 }
 0x6ff   :  { %v866_v1 = vpop.f32.mrb[16].mxu1 }
 0x700   :  { %v1418_v2 = vpop.f32.mrb[17].mxu1 }
 0x701   :  { %v869_v3 = vpop.f32.mrb[18].mxu1 }
 0x702   :  { %v873_v4 = vpack.c.bf16 %v869_v3, %v866_v1  ;;  %v1419_v5 = vpop.f32.mrb[19].mxu1 }
 0x704   :  { %1189 = vmatmul.mubr.bf16.vlgmr.msra.gmra.mrb[16].mxu0 %v873_v4 }
 0x7d0   :  { %v1344_v6 = vpop.f32.mrb[20].mxu1 }
 0x7d1   :  { %v1345_v7 = vpop.f32.mrb[21].mxu1 }
 0x7d2   :  { %v1346_v8 = vadd.f32 %v1345_v7, %v1344_v6  ;;  %v1347_v9 = vpop.f32.mrb[22].mxu1 }
 0x7d3   :  { %v1348_v10 = vpop.f32.mrb[23].mxu1 }
 0x7d4   :  { %v1349_v11 = vadd.f32 %v1348_v10, %v1347_v9  ;;  %v1150_v15 = vadd.f32 %v1346_v8, %v1254_v12 }
 0x7d6   :  { %v1153_v19 = vadd.f32 %v1349_v11, %v1254_v12 }
 0x7d7   :  { %v1366_v13 = vpop.f32.mrb[16].mxu0 }
 0x7d8   :  { %v1367_v14 = vpop.f32.mrb[17].mxu0 }
 0x7d9   :  { %v1368_v16 = vadd.f32 %v1367_v14, %v1366_v13  ;;  %v1369_v17 = vpop.f32.mrb[18].mxu0 }
 0x7da   :  { %v1370_v18 = vpop.f32.mrb[19].mxu0 }
 0x7db   :  { %v1191_v20 = vadd.f32 %v1368_v16, %v1150_v15  ;;  %v1371_v21 = vadd.f32 %v1370_v18, %v1369_v17 }
 0x7dd   :  { %v1194_v22 = vadd.f32 %v1371_v21, %v1153_v19  ;;  %v1197_v23 = vmax.f32 %v1191_v20, 0.0 }
 0x7df   :  { %v1198_v24 = vmax.f32 %v1194_v22, 0.0 }
 0x7e1   :  { %v1199_v25 = vadd.f32 %v1198_v24, %v1197_v23 }
 0x7e3   :  { %v1200_v26 = vrot.slane %v1199_v25, 4 }
 0x7e5   :  { %v1201_v56 = vadd.f32 %v1200_v26, %v1199_v25 }
 0x7e7   :  { %v1202_v27 = vrot.slane %v1201_v56, 2 }
 0x7e9   :  { %v1203_v0 = vadd.f32 %v1202_v27, %v1201_v56 }
 0x7eb   :  { %v1204_v28 = vrot.slane %v1203_v0, 1 }
 0x7ed   :  { %v1205_v29 = vadd.f32 %v1204_v28, %v1203_v0 }
 0x7ef   :  { %v1206_v30 = vmul.f32 0.0625, %v1205_v29 }
 0x7f1   :  { %1207 = vst [vmem:[#allocation5] sm:$0x1] %v1206_v30 }
 0x7f2   :  { %1553 = shalt.err (!%p1550_p12)
}
 0x7f3   :  { %s1554_s28 = scalar_lea.hbm %s1721_s6, 16 }
 0x7f4   :  { %p1555_p13 = scmp.ne.s32.totalorder %s1721_s6, %s1554_s28  ;;  %p1558_p0 = scmp.lt.u32.totalorder %s1554_s28, %s1721_s6 }
 0x7f6   :  { %p1560_p1 = pnand %p1558_p0, %p1555_p13 }
 0x7f8   :  { %1563 = shalt.err (!%p1560_p1)
}
 0x7f9   :  { %1217 = dma.vmem_to_hbm [thread:$0]  %s1215_s5, 16, %s1721_s6, [#allocation4]  }
 0x7fa   :  { %1566 = dma.done.wait [#allocation4], 16  }
 0x7fb   :  { %1567 = vsyncadd [#allocation4], 4294967280 }
 0x7fc   :  { %1221 = vsyncpa [#allocation3], 1 }
 0x7fd   :  { %1222 = vsyncpa [#allocation4], 1 }

</bundles_post_ra>
